<compile_context>
chip_gen: v6e
topology: v6e:2x2x1
jax: 0.10.0
libtpu: 0.0.40
codegen_flags: <defaults>
</compile_context>

<pallas_src>
import functools

import jax
import jax.numpy as jnp
from jax.experimental import pallas as pl
from jax.experimental.pallas import tpu as pltpu

HIDDEN = 128      # fc1/fc2 width (lane-dense)
HEAD_PAD = 128    # padded width of the fused (logits | value) output slab


def policy_kernel(x_ref, wb_ref, w_ref, out_ref, *, state_dim):
    """wb_ref rows: [0:state_dim]=w1, state_dim=b1, +1=b2, +2=head_b, rest 0.
    w_ref cols:  [0:HIDDEN]=w2 (bf16), [HIDDEN:]=fused head weight (bf16)."""
    x = x_ref[...]                                     # (Tb, state_dim) f32

    # ---- fc1 on the VPU: K is tiny, the MXU would be pure latency ----------
    h = x[:, 0:1] * wb_ref[0:1, :]                     # (Tb,1)*(1,128) -> (Tb,128)
    for k in range(1, state_dim):                      # unrolled (static)
        h = h + x[:, k:k + 1] * wb_ref[k:k + 1, :]
    h = jnp.maximum(h + wb_ref[state_dim:state_dim + 1, :], 0.0)

    # ---- fc2 + relu: bf16 MXU operands, f32 accumulate / elementwise -------
    h = jnp.dot(h.astype(jnp.bfloat16), w_ref[:, :HIDDEN],
                preferred_element_type=jnp.float32)
    h = jnp.maximum(h + wb_ref[state_dim + 1:state_dim + 2, :], 0.0)

    # ---- fused heads (action logits | value | zero pad), lane-dense store --
    out = jnp.dot(h.astype(jnp.bfloat16), w_ref[:, HIDDEN:],
                  preferred_element_type=jnp.float32)
    out_ref[...] = out + wb_ref[state_dim + 2:state_dim + 3, :]


def init_linear(key, fan_in, fan_out):
    """PyTorch nn.Linear-style init (U[-1/sqrt(fan_in), 1/sqrt(fan_in)]).
    Weight stored as (fan_in, fan_out); bias as (fan_out,)."""
    kw, kb = jax.random.split(key)
    bound = 1.0 / jnp.sqrt(fan_in)
    w = jax.random.uniform(kw, (fan_in, fan_out), jnp.float32, -bound, bound)
    b = jax.random.uniform(kb, (fan_out,), jnp.float32, -bound, bound)
    return w, b


def pack_params(params, action_dim):
    """ONE-TIME packing (run at init, NOT per forward call)."""
    (w1, b1), (w2, b2), (w3, b3), (wv, bv) = params
    state_dim, hidden = w1.shape
    assert hidden == HIDDEN and w2.shape == (HIDDEN, HIDDEN)
    assert HEAD_PAD == HIDDEN
    # Value column sits at index `action_dim`; it must fit inside the pad.
    assert action_dim + 1 <= HEAD_PAD, "action_dim too large for HEAD_PAD"
    assert state_dim + 3 <= ((state_dim + 3 + 7) // 8) * 8

    head_w = jnp.zeros((HIDDEN, HEAD_PAD), jnp.float32)
    head_w = head_w.at[:, :action_dim].set(w3)
    head_w = head_w.at[:, action_dim].set(wv[:, 0])

    head_b = jnp.zeros((HEAD_PAD,), jnp.float32)
    head_b = head_b.at[:action_dim].set(b3)
    head_b = head_b.at[action_dim].set(bv[0])

    rows = ((state_dim + 3 + 7) // 8) * 8              # sublane-pad to 8
    wb = jnp.zeros((rows, HIDDEN), jnp.float32)
    wb = wb.at[:state_dim, :].set(w1)
    wb = wb.at[state_dim, :].set(b1)
    wb = wb.at[state_dim + 1, :].set(b2)
    wb = wb.at[state_dim + 2, :].set(head_b)

    w2wh = jnp.concatenate([w2, head_w], axis=1).astype(jnp.bfloat16)  # (128,256)
    return wb, w2wh


@functools.partial(jax.jit, static_argnames=("action_dim",))
def policy_forward(x, wb, w2wh, *, action_dim):
    """x: (B, state_dim) f32. Returns (logits (B, action_dim), value (B, 1))."""
    B, state_dim = x.shape

    Tb = 128 if B >= 128 else B                        # batch tile
    Bpad = ((B + Tb - 1) // Tb) * Tb
    if Bpad != B:
        x = jnp.pad(x, ((0, Bpad - B), (0, 0)))
    num_tiles = Bpad // Tb

    kernel = functools.partial(policy_kernel, state_dim=state_dim)

    cost = pl.CostEstimate(
        flops=2 * Bpad * (state_dim * HIDDEN + HIDDEN * HIDDEN + HIDDEN * HEAD_PAD),
        transcendentals=0,
        bytes_accessed=(Bpad * state_dim * 4 + wb.size * 4 + w2wh.size * 2
                        + Bpad * HEAD_PAD * 4),
    )

    out = pl.pallas_call(
        kernel,
        out_shape=jax.ShapeDtypeStruct((Bpad, HEAD_PAD), jnp.float32),
        grid_spec=pltpu.PrefetchScalarGridSpec(
            num_scalar_prefetch=0,
            grid=(num_tiles,),
            in_specs=[
                pl.BlockSpec((Tb, state_dim), lambda i: (i, 0)),
                # Constant index_maps: weights stay VMEM-resident across steps.
                pl.BlockSpec(wb.shape, lambda i: (0, 0)),
                pl.BlockSpec(w2wh.shape, lambda i: (0, 0)),
            ],
            out_specs=pl.BlockSpec((Tb, HEAD_PAD), lambda i: (i, 0)),
        ),
        compiler_params=pltpu.CompilerParams(
            dimension_semantics=("parallel",)),
        cost_estimate=cost,
    )(x, wb, w2wh)

    # Wrapper-side split of the fused lane-dense output slab (fused by jit).
    action_logits = out[:B, :action_dim]
    state_value = out[:B, action_dim:action_dim + 1]
    return action_logits, state_value


if __name__ == "__main__":
    # CartPole-v1: state_dim = 4, action_dim = 2
    state_dim, action_dim, hidden = 4, 2, HIDDEN
    batch = 128   # fill MXU rows; at batch=8 the kernel is pure launch overhead

    root = jax.random.PRNGKey(0)
    k_x, k1, k2, k3, kv = jax.random.split(root, 5)

    params = (
        init_linear(k1, state_dim, hidden),   # fc1
        init_linear(k2, hidden, hidden),      # fc2
        init_linear(k3, hidden, action_dim),  # fc3
        init_linear(kv, hidden, 1),           # value_head
    )

    # One-time packing, hoisted out of the (rollout) loop.
    wb, w2wh = jax.block_until_ready(pack_params(params, action_dim))

    x = jax.random.normal(k_x, (batch, state_dim), jnp.float32)

    logits, value = policy_forward(x, wb, w2wh, action_dim=action_dim)
    jax.block_until_ready((logits, value))

    # Pure-JAX f32 reference (looser tolerance: kernel uses bf16 MXU operands).
    (w1, b1), (w2, b2), (w3, b3), (wv, bv) = params
    h = jnp.maximum(x @ w1 + b1, 0.0)
    h = jnp.maximum(h @ w2 + b2, 0.0)
    ref_logits = h @ w3 + b3
    ref_value = h @ wv + bv

    assert logits.shape == (batch, action_dim) and value.shape == (batch, 1)
    assert jnp.allclose(logits, ref_logits, atol=2e-2, rtol=2e-2), (
        float(jnp.max(jnp.abs(logits - ref_logits))))
    assert jnp.allclose(value, ref_value, atol=2e-2, rtol=2e-2), (
        float(jnp.max(jnp.abs(value - ref_value))))

    print("KERNEL_OK")
</pallas_src>

<mosaic_0001>
module attributes {stable_mosaic.version = 11 : i64} {
  func.func @policy_kernel(%arg0: i32, %arg1: memref<128x4xf32, #tpu.memory_space<vmem>>, %arg2: memref<8x128xf32, #tpu.memory_space<vmem>>, %arg3: memref<128x256xbf16, #tpu.memory_space<vmem>>, %arg4: memref<128x128xf32, #tpu.memory_space<vmem>>) attributes {dimension_semantics = [#tpu.dimension_semantics<parallel>], iteration_bounds = array<i64: 1>, scalar_prefetch = 0 : i64, scratch_operands = 0 : i64, tpu.core_type = #tpu.core_type<tc>, window_params = [{transform_indices = @transform_0, window_bounds = array<i64: 128, 4>}, {pipeline_mode = #tpu.pipeline_mode<synchronous>, transform_indices = @transform_1, window_bounds = array<i64: 8, 128>}, {pipeline_mode = #tpu.pipeline_mode<synchronous>, transform_indices = @transform_2, window_bounds = array<i64: 128, 256>}, {transform_indices = @transform_3, window_bounds = array<i64: 128, 128>}]} {
    %c0 = arith.constant 0 : index
    %c0_0 = arith.constant 0 : index
    %0 = vector.load %arg1[%c0, %c0_0] : memref<128x4xf32, #tpu.memory_space<vmem>>, vector<128x4xf32>
    %1 = vector.extract_strided_slice %0 {offsets = [0, 0], sizes = [128, 1], strides = [1, 1]} : vector<128x4xf32> to vector<128x1xf32>
    %c0_1 = arith.constant 0 : index
    %c0_2 = arith.constant 0 : index
    %2 = vector.load %arg2[%c0_1, %c0_2] : memref<8x128xf32, #tpu.memory_space<vmem>>, vector<1x128xf32>
    %3 = vector.broadcast %1 : vector<128x1xf32> to vector<128x128xf32>
    %4 = vector.broadcast %2 : vector<1x128xf32> to vector<128x128xf32>
    %5 = arith.mulf %3, %4 : vector<128x128xf32>
    %6 = vector.extract_strided_slice %0 {offsets = [0, 1], sizes = [128, 1], strides = [1, 1]} : vector<128x4xf32> to vector<128x1xf32>
    %c1 = arith.constant 1 : index
    %c0_3 = arith.constant 0 : index
    %7 = vector.load %arg2[%c1, %c0_3] : memref<8x128xf32, #tpu.memory_space<vmem>>, vector<1x128xf32>
    %8 = vector.broadcast %6 : vector<128x1xf32> to vector<128x128xf32>
    %9 = vector.broadcast %7 : vector<1x128xf32> to vector<128x128xf32>
    %10 = arith.mulf %8, %9 : vector<128x128xf32>
    %11 = arith.addf %5, %10 : vector<128x128xf32>
    %12 = vector.extract_strided_slice %0 {offsets = [0, 2], sizes = [128, 1], strides = [1, 1]} : vector<128x4xf32> to vector<128x1xf32>
    %c2 = arith.constant 2 : index
    %c0_4 = arith.constant 0 : index
    %13 = vector.load %arg2[%c2, %c0_4] : memref<8x128xf32, #tpu.memory_space<vmem>>, vector<1x128xf32>
    %14 = vector.broadcast %12 : vector<128x1xf32> to vector<128x128xf32>
    %15 = vector.broadcast %13 : vector<1x128xf32> to vector<128x128xf32>
    %16 = arith.mulf %14, %15 : vector<128x128xf32>
    %17 = arith.addf %11, %16 : vector<128x128xf32>
    %18 = vector.extract_strided_slice %0 {offsets = [0, 3], sizes = [128, 1], strides = [1, 1]} : vector<128x4xf32> to vector<128x1xf32>
    %c3 = arith.constant 3 : index
    %c0_5 = arith.constant 0 : index
    %19 = vector.load %arg2[%c3, %c0_5] : memref<8x128xf32, #tpu.memory_space<vmem>>, vector<1x128xf32>
    %20 = vector.broadcast %18 : vector<128x1xf32> to vector<128x128xf32>
    %21 = vector.broadcast %19 : vector<1x128xf32> to vector<128x128xf32>
    %22 = arith.mulf %20, %21 : vector<128x128xf32>
    %23 = arith.addf %17, %22 : vector<128x128xf32>
    %c4 = arith.constant 4 : index
    %c0_6 = arith.constant 0 : index
    %24 = vector.load %arg2[%c4, %c0_6] : memref<8x128xf32, #tpu.memory_space<vmem>>, vector<1x128xf32>
    %25 = vector.broadcast %24 : vector<1x128xf32> to vector<128x128xf32>
    %26 = arith.addf %23, %25 : vector<128x128xf32>
    %cst = arith.constant 0.000000e+00 : f32
    %27 = vector.broadcast %cst : f32 to vector<128x128xf32>
    %28 = arith.maximumf %26, %27 : vector<128x128xf32>
    %29 = arith.truncf %28 : vector<128x128xf32> to vector<128x128xbf16>
    %c0_7 = arith.constant 0 : index
    %c0_8 = arith.constant 0 : index
    %30 = vector.load %arg3[%c0_7, %c0_8] : memref<128x256xbf16, #tpu.memory_space<vmem>>, vector<128x128xbf16>
    %cst_9 = arith.constant dense<0.000000e+00> : vector<128x128xf32>
    %31 = tpu.matmul %29, %30, %cst_9 {dimension_numbers = #tpu.dot_dimension_numbers<[1], [0], [0], [1], [0, 0, 1, 1], [], []>} : vector<128x128xbf16>, vector<128x128xbf16>, vector<128x128xf32> -> vector<128x128xf32>
    %c5 = arith.constant 5 : index
    %c0_10 = arith.constant 0 : index
    %32 = vector.load %arg2[%c5, %c0_10] : memref<8x128xf32, #tpu.memory_space<vmem>>, vector<1x128xf32>
    %33 = vector.broadcast %32 : vector<1x128xf32> to vector<128x128xf32>
    %34 = arith.addf %31, %33 : vector<128x128xf32>
    %cst_11 = arith.constant 0.000000e+00 : f32
    %35 = vector.broadcast %cst_11 : f32 to vector<128x128xf32>
    %36 = arith.maximumf %34, %35 : vector<128x128xf32>
    %37 = arith.truncf %36 : vector<128x128xf32> to vector<128x128xbf16>
    %c0_12 = arith.constant 0 : index
    %c128 = arith.constant 128 : index
    %38 = vector.load %arg3[%c0_12, %c128] : memref<128x256xbf16, #tpu.memory_space<vmem>>, vector<128x128xbf16>
    %cst_13 = arith.constant dense<0.000000e+00> : vector<128x128xf32>
    %39 = tpu.matmul %37, %38, %cst_13 {dimension_numbers = #tpu.dot_dimension_numbers<[1], [0], [0], [1], [0, 0, 1, 1], [], []>} : vector<128x128xbf16>, vector<128x128xbf16>, vector<128x128xf32> -> vector<128x128xf32>
    %c6 = arith.constant 6 : index
    %c0_14 = arith.constant 0 : index
    %40 = vector.load %arg2[%c6, %c0_14] : memref<8x128xf32, #tpu.memory_space<vmem>>, vector<1x128xf32>
    %41 = vector.broadcast %40 : vector<1x128xf32> to vector<128x128xf32>
    %42 = arith.addf %39, %41 : vector<128x128xf32>
    %c0_15 = arith.constant 0 : index
    %c0_16 = arith.constant 0 : index
    %43 = vector.load %arg4[%c0_15, %c0_16] : memref<128x128xf32, #tpu.memory_space<vmem>>, vector<128x128xf32>
    tpu.vector_store %arg4[%c0_15, %c0_16], %42 {strides = array<i32>} : memref<128x128xf32, #tpu.memory_space<vmem>>, vector<128x128xf32>,
    return
  }
  func.func @transform_0(%arg0: i32) -> (i32, i32) {
    %c0_i32 = arith.constant 0 : i32
    %c0_i32_0 = arith.constant 0 : i32
    return %arg0, %c0_i32 : i32, i32
  }
  func.func @transform_1(%arg0: i32) -> (i32, i32) {
    %c0_i32 = arith.constant 0 : i32
    %c0_i32_0 = arith.constant 0 : i32
    %c0_i32_1 = arith.constant 0 : i32
    return %c0_i32, %c0_i32_0 : i32, i32
  }
  func.func @transform_2(%arg0: i32) -> (i32, i32) {
    %c0_i32 = arith.constant 0 : i32
    %c0_i32_0 = arith.constant 0 : i32
    %c0_i32_1 = arith.constant 0 : i32
    return %c0_i32, %c0_i32_0 : i32, i32
  }
  func.func @transform_3(%arg0: i32) -> (i32, i32) {
    %c0_i32 = arith.constant 0 : i32
    %c0_i32_0 = arith.constant 0 : i32
    return %arg0, %c0_i32 : i32, i32
  }
}

</mosaic_0001>

<bundles_post_ra>
// kernel: policy_forward.1
= control target key start
LH: loop header
LB: loop body
LE: loop exit
PB: predicated region body
PF: predicated region fallthrough
CT: control target
= control target key end

     0   :  { %8 = vsyncpa [#allocation3], 0  ;;  %s1058_s12 = smov [#allocation2]   ;;  %s1446_s0 = inlined_call_operand.vmem [shape: f32[128,4], index: 0, kind: input, shape index: {}]   ;;  %s1447_s1 = inlined_call_operand.hbm [shape: f32[8,128], index: 1, kind: input, shape index: {}]   ;;  %s1448_s2 = inlined_call_operand.vmem [shape: bf16[128,256], index: 2, kind: input, shape index: {}]   ;;  %s1449_s3 = inlined_call_operand.vmem [shape: f32[128,128], index: 3, kind: output, shape index: {}]  }
   0x1   :  { %s17_s13 = sshll.u32 %s1058_s12, 4  ;;  %s18_s13 = int_to_ptr.vmem [resolvable:$true] %s17_s13 }
   0x2   :  { %s1044_s14 = scalar_lea.vmem %s18_s13, 128  ;;  %p1049_p1 = scmp.lt.s32.totalorder %s18_s13, %s18_s13 }
   0x3   :  { %p1045_p0 = scmp.ne.s32.totalorder %s18_s13, %s1044_s14  ;;  %p1050_p2 = scmp.lt.s32.totalorder %s1044_s14, %s1044_s14 }
   0x5   :  { %p1051_p3 = por %p1050_p2, %p1049_p1 }
   0x7   :  { %p1052_p4 = pnand %p1051_p3, %p1045_p0 }
   0x9   :  { %1055 = shalt.err (!%p1052_p4)
}
   0xa   :  { %20 = dma.hbm_to_vmem [thread:$0]  %s1447_s1, 128, %s18_s13, [#allocation3]  }
   0xb   :  { %1056 = dma.done.wait [#allocation3], 128  }
   0xc   :  { %1057 = vsyncadd [#allocation3], 4294967168  ;;  %v1059_v0 = vmov 1   ;;  %v1060_v1 = vmov 0   ;;  %v1091_v2 = vld [vmem:[%s1446_s0] sm:$0xff]  ;;  %v28_v3 = vld [vmem:[%s1446_s0 + $0x8] sm:$0xff] }
   0xd   :  { %994 = vset.pattern.permute.xlu1 %v1059_v0  ;;  %993 = vset.pattern.permute.xlu0 %v1060_v1  ;;  %v29_v4 = vld [vmem:[%s1446_s0 + $0x10] sm:$0xff]  ;;  %v1104_v5 = vld [vmem:[%s1446_s0 + $0x18] sm:$0xff]  ;;  %v1109_v6 = vld [vmem:[%s1446_s0 + $0x28] sm:$0xff]  ;;  %v1061_v9 = vmov 2   ;;  %v1062_v13 = vmov 3  }
   0xe   :  { %146 = vperm.xlu1 %994, %v1091_v2   ;;  %46 = vperm.xlu0 %993, %v1091_v2   ;;  %v1116_v7 = vld [vmem:[%s1446_s0 + $0x30] sm:$0xff]  ;;  %v1125_v8 = vld [vmem:[%s1446_s0 + $0x48] sm:$0xff]  ;;  %v31_v14 = vld [vmem:[%s1446_s0 + $0x20] sm:$0xff] }
   0xf   :  { %v1133_v10 = vld [vmem:[%s1446_s0 + $0x50] sm:$0xff]  ;;  %v1139_v11 = vld [vmem:[%s1446_s0 + $0x68] sm:$0xff]  ;;  %v34_v17 = vld [vmem:[%s1446_s0 + $0x38] sm:$0xff] }
  0x10   :  { %v1146_v12 = vld [vmem:[%s1446_s0 + $0x70] sm:$0xff]  ;;  %v1021_v16 = vld [vmem:[%s1448_s2 + $0x60] ss:$8 sps:$4 sm:$0xff]   ;;  %v38_v25 = vld [vmem:[%s1446_s0 + $0x58] sm:$0xff] }
  0x11   :  { %v1020_v15 = vld [vmem:[%s1448_s2 + $0x70] ss:$8 sps:$4 sm:$0xff]   ;;  %v1023_v19 = vld [vmem:[%s1448_s2 + $0x40] ss:$8 sps:$4 sm:$0xff]   ;;  %v1028_v63 = vld [vmem:[%s1448_s2 + $0x74] ss:$8 sps:$4 sm:$0xff]  }
  0x12   :  { %150 = vperm.xlu1 %994, %v28_v3   ;;  %51 = vperm.xlu0 %993, %v28_v3   ;;  %v1022_v18 = vld [vmem:[%s1448_s2 + $0x50] ss:$8 sps:$4 sm:$0xff]   ;;  %v1025_v21 = vld [vmem:[%s1448_s2 + $0x20] ss:$8 sps:$4 sm:$0xff]  }
  0x13   :  { %924 = vmatprep.subr.bf16.mxu0 %v1020_v15  ;;  %v1024_v20 = vld [vmem:[%s1448_s2 + $0x30] ss:$8 sps:$4 sm:$0xff]   ;;  %v1027_v23 = vld [vmem:[%s1448_s2] ss:$8 sps:$4 sm:$0xff]   ;;  %956 = vmatprep.subr.bf16.mxu1 %v1028_v63 }
  0x14   :  { %925 = vmatpush3.bf16.msra.mxu0 %v1020_v15  ;;  %v1026_v22 = vld [vmem:[%s1448_s2 + $0x10] ss:$8 sps:$4 sm:$0xff]   ;;  %v35_v24 = vld [vmem:[%s1446_s0 + $0x40] sm:$0xff]  ;;  %957 = vmatpush3.bf16.msra.mxu1 %v1028_v63 }
  0x15   :  { %926 = vmatprep.subr.bf16.mxu0 %v1021_v16  ;;  %v39_v26 = vld [vmem:[%s1446_s0 + $0x60] sm:$0xff]  ;;  %v42_v27 = vld [vmem:[%s1446_s0 + $0x78] sm:$0xff] }
  0x16   :  { %995 = vset.pattern.permute.xlu1 %v1060_v1  ;;  %56 = vperm.xlu0 %993, %v29_v4   ;;  %v1252_v49 = vld [vmem:[#allocation2] ss:$0 sm:$0xff]  ;;  %v1255_v51 = vld [vmem:[#allocation2 + $0x1] ss:$0 sm:$0xff]  ;;  %v1031_v15 = vld [vmem:[%s1448_s2 + $0x44] ss:$8 sps:$4 sm:$0xff]  }
  0x17   :  { %61 = vperm.xlu1 %995, %v1104_v5  }
  0x18   :  { %927 = vmatpush3.bf16.msra.mxu0 %v1021_v16 }
  0x19   :  { %928 = vmatprep.subr.bf16.mxu0 %v1022_v18 }
  0x1a   :  { %71 = vperm.xlu0 %993, %v1109_v6  }
  0x1b   :  { %996 = vset.pattern.permute.xlu1 %v1059_v0 }
  0x1c   :  { %158 = vperm.xlu1 %996, %v1104_v5   ;;  %929 = vmatpush3.bf16.msra.mxu0 %v1022_v18 }
  0x1d   :  { %930 = vmatprep.subr.bf16.mxu0 %v1023_v19 }
  0x1e   :  { %76 = vperm.xlu0 %993, %v1116_v7  }
  0x20   :  { %997 = vset.pattern.permute.xlu1 %v1061_v9  ;;  %931 = vmatpush3.bf16.msra.mxu0 %v1023_v19 }
  0x21   :  { %247 = vperm.xlu1 %997, %v1091_v2   ;;  %932 = vmatprep.subr.bf16.mxu0 %v1024_v20 }
  0x22   :  { %91 = vperm.xlu0 %993, %v1125_v8  }
  0x24   :  { %933 = vmatpush3.bf16.msra.mxu0 %v1024_v20 }
  0x25   :  { %255 = vperm.xlu1 %997, %v29_v4   ;;  %934 = vmatprep.subr.bf16.mxu0 %v1025_v21 }
  0x26   :  { %96 = vperm.xlu0 %993, %v1133_v10  }
  0x28   :  { %935 = vmatpush3.bf16.msra.mxu0 %v1025_v21 }
  0x29   :  { %259 = vperm.xlu1 %997, %v1104_v5   ;;  %936 = vmatprep.subr.bf16.mxu0 %v1026_v22 }
  0x2a   :  { %111 = vperm.xlu0 %993, %v1139_v11  }
  0x2c   :  { %937 = vmatpush3.bf16.msra.mxu0 %v1026_v22 }
  0x2d   :  { %998 = vset.pattern.permute.xlu1 %v1062_v13  ;;  %938 = vmatprep.subr.bf16.mxu0 %v1027_v23 }
  0x2e   :  { %352 = vperm.xlu1 %998, %v28_v3   ;;  %116 = vperm.xlu0 %993, %v1146_v12  }
  0x30   :  { %939 = vmatpush3.bf16.msra.mxu0 %v1027_v23 }
  0x32   :  { %356 = vperm.xlu1 %998, %v29_v4   ;;  %1013 = vset.pattern.permute.xlu0 %v1059_v0 }
  0x33   :  { %154 = vperm.xlu0 %1013, %v29_v4  }
  0x36   :  { %999 = vset.pattern.permute.xlu1 %v1060_v1 }
  0x37   :  { %66 = vperm.xlu1 %999, %v31_v14   ;;  %170 = vperm.xlu0 %1013, %v1116_v7  }
  0x3b   :  { %1000 = vset.pattern.permute.xlu1 %v1059_v0  ;;  %186 = vperm.xlu0 %1013, %v1133_v10  }
  0x3c   :  { %162 = vperm.xlu1 %1000, %v31_v14  }
  0x3f   :  { %202 = vperm.xlu0 %1013, %v1146_v12  }
  0x40   :  { %166 = vperm.xlu1 %1000, %v1109_v6  }
  0x43   :  { %1015 = vset.pattern.permute.xlu0 %v1061_v9 }
  0x44   :  { %1001 = vset.pattern.permute.xlu1 %v1060_v1  ;;  %251 = vperm.xlu0 %1015, %v28_v3  }
  0x45   :  { %81 = vperm.xlu1 %1001, %v34_v17  }
  0x48   :  { %267 = vperm.xlu0 %1015, %v1109_v6  }
  0x49   :  { %1002 = vset.pattern.permute.xlu1 %v1059_v0 }
  0x4a   :  { %174 = vperm.xlu1 %1002, %v34_v17  }
  0x4c   :  { %283 = vperm.xlu0 %1015, %v1125_v8  }
  0x4e   :  { %1003 = vset.pattern.permute.xlu1 %v1061_v9 }
  0x4f   :  { %263 = vperm.xlu1 %1003, %v31_v14  }
  0x50   :  { %299 = vperm.xlu0 %1015, %v1139_v11  }
  0x53   :  { %271 = vperm.xlu1 %1003, %v1116_v7  }
  0x54   :  { %1018 = vset.pattern.permute.xlu0 %v1062_v13 }
  0x55   :  { %348 = vperm.xlu0 %1018, %v1091_v2  }
  0x57   :  { %275 = vperm.xlu1 %1003, %v34_v17  }
  0x59   :  { %360 = vperm.xlu0 %1018, %v1104_v5  }
  0x5b   :  { %1004 = vset.pattern.permute.xlu1 %v1062_v13 }
  0x5c   :  { %368 = vperm.xlu1 %1004, %v1109_v6   ;;  %v1280_v6 = vld [vmem:[#allocation2 + $0x2] ss:$0 sm:$0xff] }
  0x5d   :  { %364 = vperm.xlu0 %1018, %v31_v14  }
  0x60   :  { %372 = vperm.xlu1 %1004, %v1116_v7  }
  0x61   :  { %376 = vperm.xlu0 %1018, %v34_v17  }
  0x64   :  { %1005 = vset.pattern.permute.xlu1 %v1060_v1 }
  0x65   :  { %86 = vperm.xlu1 %1005, %v35_v24   ;;  %380 = vperm.xlu0 %1018, %v35_v24  }
  0x69   :  { %1006 = vset.pattern.permute.xlu1 %v1059_v0  ;;  %392 = vperm.xlu0 %1018, %v38_v25  }
  0x6a   :  { %178 = vperm.xlu1 %1006, %v35_v24  }
  0x6d   :  { %396 = vperm.xlu0 %1018, %v39_v26  }
  0x6e   :  { %182 = vperm.xlu1 %1006, %v1125_v8  }
  0x71   :  { %408 = vperm.xlu0 %1018, %v42_v27  }
  0x72   :  { %1007 = vset.pattern.permute.xlu1 %v1060_v1 }
  0x73   :  { %101 = vperm.xlu1 %1007, %v38_v25  }
  0x77   :  { %1008 = vset.pattern.permute.xlu1 %v1059_v0 }
  0x78   :  { %190 = vperm.xlu1 %1008, %v38_v25  }
  0x7c   :  { %1009 = vset.pattern.permute.xlu1 %v1061_v9 }
  0x7d   :  { %279 = vperm.xlu1 %1009, %v35_v24  }
  0x81   :  { %287 = vperm.xlu1 %1009, %v1133_v10  }
  0x85   :  { %291 = vperm.xlu1 %1009, %v38_v25   ;;  %v1032_v25 = vld [vmem:[%s1448_s2 + $0x34] ss:$8 sps:$4 sm:$0xff]  }
  0x89   :  { %1010 = vset.pattern.permute.xlu1 %v1062_v13  ;;  %v1221_v28 = vpop.permute.xlu1 %146  ;;  %v1223_v29 = vpop.permute.xlu0 %46 }
  0x8a   :  { %384 = vperm.xlu1 %1010, %v1125_v8   ;;  %v1030_v8 = vld [vmem:[%s1448_s2 + $0x54] ss:$8 sps:$4 sm:$0xff]   ;;  %v213_v16 = vmul.f32 %v1255_v51, %v1221_v28  ;;  %v128_v17 = vmul.f32 %v1252_v49, %v1223_v29 }
  0x8d   :  { %v151_v30 = vpop.permute.xlu1 %150  ;;  %v52_v31 = vpop.permute.xlu0 %51 }
  0x8e   :  { %388 = vperm.xlu1 %1010, %v1133_v10   ;;  %v214_v2 = vmul.f32 %v1255_v51, %v151_v30  ;;  %v129_v3 = vmul.f32 %v1252_v49, %v52_v31 }
  0x91   :  { %v57_v32 = vpop.permute.xlu0 %56 }
  0x92   :  { %1011 = vset.pattern.permute.xlu1 %v1060_v1  ;;  %v1228_v33 = vpop.permute.xlu1 %61  ;;  %v130_v5 = vmul.f32 %v1252_v49, %v57_v32 }
  0x93   :  { %106 = vperm.xlu1 %1011, %v39_v26   ;;  %v131_v29 = vmul.f32 %v1252_v49, %v1228_v33 }
  0x95   :  { %v1230_v34 = vpop.permute.xlu0 %71 }
  0x97   :  { %1012 = vset.pattern.permute.xlu1 %v1059_v0  ;;  %v1233_v35 = vpop.permute.xlu1 %158 }
  0x98   :  { %194 = vperm.xlu1 %1012, %v39_v26  }
  0x99   :  { %v1235_v36 = vpop.permute.xlu0 %76 }
  0x9a   :  { %v134_v30 = vmul.f32 %v1252_v49, %v1235_v36 }
  0x9c   :  { %198 = vperm.xlu1 %1012, %v1139_v11   ;;  %v1238_v37 = vpop.permute.xlu1 %247 }
  0x9d   :  { %v1240_v38 = vpop.permute.xlu0 %91  ;;  %v314_v21 = vmul.f32 %v1280_v6, %v1238_v37 }
  0xa0   :  { %1014 = vset.pattern.permute.xlu1 %v1060_v1  ;;  %v256_v39 = vpop.permute.xlu1 %255 }
  0xa1   :  { %121 = vperm.xlu1 %1014, %v42_v27   ;;  %v97_v40 = vpop.permute.xlu0 %96  ;;  %v316_v20 = vmul.f32 %v1280_v6, %v256_v39 }
  0xa2   :  { %v138_v50 = vmul.f32 %v1252_v49, %v97_v40 }
  0xa4   :  { %v1243_v41 = vpop.permute.xlu1 %259 }
  0xa5   :  { %1016 = vset.pattern.permute.xlu1 %v1059_v0  ;;  %v1246_v42 = vpop.permute.xlu0 %111  ;;  %v1029_v0 = vld [vmem:[%s1448_s2 + $0x64] ss:$8 sps:$4 sm:$0xff]   ;;  %v317_v39 = vmul.f32 %v1280_v6, %v1243_v41 }
  0xa6   :  { %206 = vperm.xlu1 %1016, %v42_v27   ;;  %958 = vmatprep.subr.bf16.mxu1 %v1029_v0 }
  0xa7   :  { %959 = vmatpush3.bf16.msra.mxu1 %v1029_v0 }
  0xa8   :  { %960 = vmatprep.subr.bf16.mxu1 %v1030_v8 }
  0xa9   :  { %v353_v43 = vpop.permute.xlu1 %352  ;;  %v117_v44 = vpop.permute.xlu0 %116 }
  0xaa   :  { %1017 = vset.pattern.permute.xlu1 %v1061_v9  ;;  %v142_v55 = vmul.f32 %v1252_v49, %v117_v44 }
  0xab   :  { %295 = vperm.xlu1 %1017, %v39_v26   ;;  %961 = vmatpush3.bf16.msra.mxu1 %v1030_v8  ;;  %v229_v26 = vadd.f32 %v213_v16, %v128_v17 }
  0xac   :  { %962 = vmatprep.subr.bf16.mxu1 %v1031_v15 }
  0xad   :  { %v357_v45 = vpop.permute.xlu1 %356  ;;  %v330_v37 = vadd.f32 %v314_v21, %v229_v26 }
  0xae   :  { %v155_v46 = vpop.permute.xlu0 %154 }
  0xaf   :  { %303 = vperm.xlu1 %1017, %v1146_v12   ;;  %v215_v7 = vmul.f32 %v1255_v51, %v155_v46  ;;  %963 = vmatpush3.bf16.msra.mxu1 %v1031_v15 }
  0xb0   :  { %964 = vmatprep.subr.bf16.mxu1 %v1032_v25 }
  0xb2   :  { %v1250_v47 = vpop.permute.xlu1 %66  ;;  %v171_v48 = vpop.permute.xlu0 %170 }
  0xb3   :  { %307 = vperm.xlu1 %1017, %v42_v27   ;;  %v216_v27 = vmul.f32 %v1255_v51, %v1233_v35  ;;  %v219_v40 = vmul.f32 %v1255_v51, %v171_v48  ;;  %v133_v35 = vmul.f32 %v1252_v49, %v1230_v34  ;;  %v132_v48 = vmul.f32 %v1252_v49, %v1250_v47 }
  0xb4   :  { %965 = vmatpush3.bf16.msra.mxu1 %v1032_v25 }
  0xb6   :  { %v187_v52 = vpop.permute.xlu0 %186 }
  0xb7   :  { %1019 = vset.pattern.permute.xlu1 %v1062_v13  ;;  %v163_v53 = vpop.permute.xlu1 %162  ;;  %v223_v54 = vmul.f32 %v1255_v51, %v187_v52  ;;  %v231_v13 = vadd.f32 %v215_v7, %v130_v5 }
  0xb8   :  { %400 = vperm.xlu1 %1019, %v1139_v11   ;;  %v230_v11 = vadd.f32 %v214_v2, %v129_v3  ;;  %v217_v33 = vmul.f32 %v1255_v51, %v163_v53  ;;  %v235_v53 = vadd.f32 %v219_v40, %v134_v30 }
  0xb9   :  { %v1261_v56 = vadd.f32 %v223_v54, %v138_v50  ;;  %v332_v23 = vadd.f32 %v316_v20, %v231_v13  ;;  %v232_v50 = vadd.f32 %v216_v27, %v131_v29 }
  0xba   :  { %v203_v57 = vpop.permute.xlu0 %202 }
  0xbb   :  { %v167_v58 = vpop.permute.xlu1 %166  ;;  %v227_v59 = vmul.f32 %v1255_v51, %v203_v57  ;;  %v333_v57 = vadd.f32 %v317_v39, %v232_v50 }
  0xbc   :  { %404 = vperm.xlu1 %1019, %v1146_v12   ;;  %v1289_v12 = vld [vmem:[#allocation2 + $0x3] ss:$0 sm:$0xff]  ;;  %v218_v36 = vmul.f32 %v1255_v51, %v167_v58 }
  0xbd   :  { %v1265_v60 = vadd.f32 %v227_v59, %v142_v55  ;;  %v416_v22 = vmul.f32 %v1289_v12, %v353_v43  ;;  %v417_v31 = vmul.f32 %v1289_v12, %v357_v45  ;;  %v1322_v45 = vld [vmem:[#allocation2 + $0x4] ss:$0 sm:$0xff] }
  0xbe   :  { %v234_v63 = vadd.f32 %v218_v36, %v133_v35 }
  0xbf   :  { %v252_v61 = vpop.permute.xlu0 %251  ;;  %v433_v44 = vadd.f32 %v417_v31, %v332_v23 }
  0xc0   :  { %v1267_v62 = vpop.permute.xlu1 %81  ;;  %v315_v9 = vmul.f32 %v1280_v6, %v252_v61  ;;  %v233_v61 = vadd.f32 %v217_v33, %v132_v48 }
  0xc1   :  { %v135_v0 = vmul.f32 %v1252_v49, %v1267_v62  ;;  %v454_v2 = vadd.f32 %v1322_v45, %v433_v44 }
  0xc2   :  { %v331_v18 = vadd.f32 %v315_v9, %v230_v11 }
  0xc3   :  { %v268_v1 = vpop.permute.xlu0 %267  ;;  %v470_v23 = vmax.f32 %v454_v2, 0.0  ;;  %v137_v2 = vmul.f32 %v1252_v49, %v1240_v38 }
  0xc4   :  { %v432_v28 = vadd.f32 %v416_v22, %v331_v18  ;;  %v319_v54 = vmul.f32 %v1280_v6, %v268_v1 }
  0xc5   :  { %v1277_v4 = vpop.permute.xlu1 %174 }
  0xc6   :  { %v453_v41 = vadd.f32 %v1322_v45, %v432_v28  ;;  %v220_v47 = vmul.f32 %v1255_v51, %v1277_v4  ;;  %v335_v8 = vadd.f32 %v319_v54, %v234_v63 }
  0xc7   :  { %v1287_v10 = vpop.permute.xlu0 %283 }
  0xc8   :  { %v469_v7 = vmax.f32 %v453_v41, 0.0  ;;  %v236_v4 = vadd.f32 %v220_v47, %v135_v0 }
  0xca   :  { %v264_v14 = vpop.permute.xlu1 %263 }
  0xcb   :  { %v1298_v19 = vpop.permute.xlu0 %299  ;;  %v318_v34 = vmul.f32 %v1280_v6, %v264_v14 }
  0xcd   :  { %v334_v9 = vadd.f32 %v318_v34, %v233_v61 }
  0xce   :  { %v272_v24 = vpop.permute.xlu1 %271 }
  0xcf   :  { %v320_v11 = vmul.f32 %v1280_v6, %v272_v24 }
  0xd0   :  { %v349_v32 = vpop.permute.xlu0 %348 }
  0xd1   :  { %v415_v43 = vmul.f32 %v1289_v12, %v349_v32  ;;  %v336_v25 = vadd.f32 %v320_v11, %v235_v53 }
  0xd2   :  { %v276_v46 = vpop.permute.xlu1 %275 }
  0xd3   :  { %v431_v52 = vadd.f32 %v415_v43, %v330_v37  ;;  %v321_v15 = vmul.f32 %v1280_v6, %v276_v46 }
  0xd4   :  { %v361_v55 = vpop.permute.xlu0 %360 }
  0xd5   :  { %v418_v58 = vmul.f32 %v1289_v12, %v361_v55  ;;  %v452_v59 = vadd.f32 %v1322_v45, %v431_v52  ;;  %v337_v28 = vadd.f32 %v321_v15, %v236_v4 }
  0xd7   :  { %v434_v1 = vadd.f32 %v418_v58, %v333_v57  ;;  %v369_v3 = vpop.permute.xlu1 %368  ;;  %v468_v5 = vmax.f32 %v452_v59, 0.0 }
  0xd8   :  { %v420_v13 = vmul.f32 %v1289_v12, %v369_v3  ;;  %v365_v14 = vpop.permute.xlu0 %364 }
  0xd9   :  { %v455_v62 = vadd.f32 %v1322_v45, %v434_v1  ;;  %v419_v16 = vmul.f32 %v1289_v12, %v365_v14  ;;  %v484_v17 = vpack.c.bf16 %v469_v7, %v468_v5 }
  0xda   :  { %v436_v18 = vadd.f32 %v420_v13, %v335_v8 }
  0xdb   :  { %v471_v20 = vmax.f32 %v455_v62, 0.0  ;;  %v435_v21 = vadd.f32 %v419_v16, %v334_v9  ;;  %v373_v22 = vpop.permute.xlu1 %372  ;;  %940 = vmatprep.mubr.bf16.mxu0 %v484_v17  ;;  %v323_v9 = vmul.f32 %v1280_v6, %v1287_v10 }
  0xdc   :  { %v457_v24 = vadd.f32 %v1322_v45, %v436_v18  ;;  %v421_v26 = vmul.f32 %v1289_v12, %v373_v22  ;;  %v377_v27 = vpop.permute.xlu0 %376 }
  0xdd   :  { %v456_v29 = vadd.f32 %v1322_v45, %v435_v21  ;;  %v422_v30 = vmul.f32 %v1289_v12, %v377_v27  ;;  %v485_v31 = vpack.c.bf16 %v471_v20, %v470_v23 }
  0xde   :  { %v473_v32 = vmax.f32 %v457_v24, 0.0  ;;  %v437_v37 = vadd.f32 %v421_v26, %v336_v25 }
  0xdf   :  { %v472_v39 = vmax.f32 %v456_v29, 0.0  ;;  %v438_v40 = vadd.f32 %v422_v30, %v337_v28  ;;  %941 = vmatmul.mubr.bf16.vlgmr.msra.gmra.mxu0 %v485_v31 }
  0xe0   :  { %v458_v43 = vadd.f32 %v1322_v45, %v437_v37  ;;  %v87_v35 = vpop.permute.xlu1 %86  ;;  %v381_v59 = vpop.permute.xlu0 %380 }
  0xe1   :  { %v459_v44 = vadd.f32 %v1322_v45, %v438_v40  ;;  %v486_v33 = vpack.c.bf16 %v473_v32, %v472_v39  ;;  %v136_v57 = vmul.f32 %v1252_v49, %v87_v35  ;;  %v423_v3 = vmul.f32 %v1289_v12, %v381_v59 }
  0xe2   :  { %v474_v36 = vmax.f32 %v458_v43, 0.0  ;;  %v141_v43 = vmul.f32 %v1252_v49, %v1246_v42 }
  0xe3   :  { %v475_v46 = vmax.f32 %v459_v44, 0.0  ;;  %944 = vmatprep.mubr.bf16.mxu0 %v486_v33  ;;  %v327_v44 = vmul.f32 %v1280_v6, %v1298_v19  ;;  %v1035_v19 = vld [vmem:[%s1448_s2 + $0x4] ss:$8 sps:$4 sm:$0xff]  }
  0xe4   :  { %v393_v8 = vpop.permute.xlu0 %392 }
  0xe5   :  { %v179_v50 = vpop.permute.xlu1 %178  ;;  %v487_v52 = vpack.c.bf16 %v475_v46, %v474_v36  ;;  %v426_v62 = vmul.f32 %v1289_v12, %v393_v8 }
  0xe6   :  { %v221_v55 = vmul.f32 %v1255_v51, %v179_v50  ;;  %v1033_v50 = vld [vmem:[%s1448_s2 + $0x24] ss:$8 sps:$4 sm:$0xff]  }
  0xe7   :  { %945 = vmatmul.mubr.bf16.gmra.mxu0 %v487_v52  ;;  %966 = vmatprep.subr.bf16.mxu1 %v1033_v50 }
  0xe8   :  { %v237_v61 = vadd.f32 %v221_v55, %v136_v57  ;;  %967 = vmatpush3.bf16.msra.mxu1 %v1033_v50  ;;  %v397_v57 = vpop.permute.xlu0 %396 }
  0xe9   :  { %v183_v41 = vpop.permute.xlu1 %182 }
  0xea   :  { %v222_v63 = vmul.f32 %v1255_v51, %v183_v41  ;;  %v1034_v41 = vld [vmem:[%s1448_s2 + $0x14] ss:$8 sps:$4 sm:$0xff]  }
  0xeb   :  { %968 = vmatprep.subr.bf16.mxu1 %v1034_v41 }
  0xec   :  { %v238_v11 = vadd.f32 %v222_v63, %v137_v2  ;;  %969 = vmatpush3.bf16.msra.mxu1 %v1034_v41  ;;  %v427_v2 = vmul.f32 %v1289_v12, %v397_v57 }
  0xed   :  { %970 = vmatprep.subr.bf16.mxu1 %v1035_v19 }
  0xee   :  { %v102_v48 = vpop.permute.xlu1 %101  ;;  %v339_v17 = vadd.f32 %v323_v9, %v238_v11 }
  0xef   :  { %v139_v47 = vmul.f32 %v1252_v49, %v102_v48 }
  0xf0   :  { %971 = vmatpush3.bf16.msra.mxu1 %v1035_v19 }
  0xf3   :  { %v191_v54 = vpop.permute.xlu1 %190 }
  0xf4   :  { %v224_v0 = vmul.f32 %v1255_v51, %v191_v54 }
  0xf6   :  { %v240_v13 = vadd.f32 %v224_v0, %v139_v47 }
  0xf8   :  { %v280_v34 = vpop.permute.xlu1 %279 }
  0xf9   :  { %v322_v53 = vmul.f32 %v1280_v6, %v280_v34 }
  0xfb   :  { %v338_v1 = vadd.f32 %v322_v53, %v237_v61 }
  0xfc   :  { %v288_v58 = vpop.permute.xlu1 %287 }
  0xfd   :  { %v439_v14 = vadd.f32 %v423_v3, %v338_v1  ;;  %v324_v38 = vmul.f32 %v1280_v6, %v288_v58  ;;  %v409_v1 = vpop.permute.xlu0 %408 }
  0xfe   :  { %v430_v8 = vmul.f32 %v1289_v12, %v409_v1 }
  0xff   :  { %v460_v4 = vadd.f32 %v1322_v45, %v439_v14  ;;  %v340_v23 = vadd.f32 %v324_v38, %v1261_v56 }
 0x100   :  { %v292_v5 = vpop.permute.xlu1 %291 }
 0x101   :  { %v325_v7 = vmul.f32 %v1280_v6, %v292_v5  ;;  %v476_v24 = vmax.f32 %v460_v4, 0.0 }
 0x103   :  { %v341_v15 = vadd.f32 %v325_v7, %v240_v13 }
 0x105   :  { %v385_v16 = vpop.permute.xlu1 %384  ;;  %v442_v20 = vadd.f32 %v426_v62, %v341_v15 }
 0x106   :  { %v424_v18 = vmul.f32 %v1289_v12, %v385_v16 }
 0x107   :  { %v463_v26 = vadd.f32 %v1322_v45, %v442_v20 }
 0x108   :  { %v440_v21 = vadd.f32 %v424_v18, %v339_v17 }
 0x109   :  { %v389_v22 = vpop.permute.xlu1 %388  ;;  %v479_v32 = vmax.f32 %v463_v26, 0.0 }
 0x10a   :  { %v461_v10 = vadd.f32 %v1322_v45, %v440_v21  ;;  %v425_v25 = vmul.f32 %v1289_v12, %v389_v22 }
 0x10c   :  { %v477_v27 = vmax.f32 %v461_v10, 0.0  ;;  %v441_v28 = vadd.f32 %v425_v25, %v340_v23 }
 0x10e   :  { %v462_v29 = vadd.f32 %v1322_v45, %v441_v28  ;;  %v107_v30 = vpop.permute.xlu1 %106  ;;  %v488_v31 = vpack.c.bf16 %v477_v27, %v476_v24 }
 0x10f   :  { %v140_v54 = vmul.f32 %v1252_v49, %v107_v30 }
 0x110   :  { %v478_v37 = vmax.f32 %v462_v29, 0.0  ;;  %948 = vmatprep.mubr.bf16.mxu0 %v488_v31 }
 0x112   :  { %v489_v39 = vpack.c.bf16 %v479_v32, %v478_v37 }
 0x113   :  { %v195_v40 = vpop.permute.xlu1 %194 }
 0x114   :  { %949 = vmatmul.mubr.bf16.gmra.mxu0 %v489_v39  ;;  %v225_v48 = vmul.f32 %v1255_v51, %v195_v40 }
 0x116   :  { %v241_v53 = vadd.f32 %v225_v48, %v140_v54 }
 0x117   :  { %v199_v56 = vpop.permute.xlu1 %198 }
 0x118   :  { %v226_v35 = vmul.f32 %v1255_v51, %v199_v56 }
 0x11a   :  { %v242_v33 = vadd.f32 %v226_v35, %v141_v43 }
 0x11c   :  { %v122_v36 = vpop.permute.xlu1 %121  ;;  %v343_v46 = vadd.f32 %v327_v44, %v242_v33 }
 0x11d   :  { %v143_v59 = vmul.f32 %v1252_v49, %v122_v36 }
 0x121   :  { %v207_v52 = vpop.permute.xlu1 %206 }
 0x122   :  { %v228_v58 = vmul.f32 %v1255_v51, %v207_v52 }
 0x124   :  { %v244_v47 = vadd.f32 %v228_v58, %v143_v59 }
 0x126   :  { %v296_v42 = vpop.permute.xlu1 %295 }
 0x127   :  { %v326_v34 = vmul.f32 %v1280_v6, %v296_v42 }
 0x129   :  { %v342_v61 = vadd.f32 %v326_v34, %v241_v53 }
 0x12a   :  { %v304_v55 = vpop.permute.xlu1 %303 }
 0x12b   :  { %v443_v3 = vadd.f32 %v427_v2, %v342_v61  ;;  %v328_v9 = vmul.f32 %v1280_v6, %v304_v55 }
 0x12d   :  { %v464_v49 = vadd.f32 %v1322_v45, %v443_v3  ;;  %v344_v15 = vadd.f32 %v328_v9, %v1265_v60  ;;  %v874_v60 = vld [vmem:[#allocation2 + $0x5] ss:$0 sm:$0xff] }
 0x12e   :  { %v308_v63 = vpop.permute.xlu1 %307 }
 0x12f   :  { %v329_v0 = vmul.f32 %v1280_v6, %v308_v63  ;;  %v480_v18 = vmax.f32 %v464_v49, 0.0 }
 0x131   :  { %v345_v5 = vadd.f32 %v329_v0, %v244_v47 }
 0x133   :  { %v401_v7 = vpop.permute.xlu1 %400  ;;  %v446_v51 = vadd.f32 %v430_v8, %v345_v5 }
 0x134   :  { %v428_v11 = vmul.f32 %v1289_v12, %v401_v7 }
 0x135   :  { %v467_v4 = vadd.f32 %v1322_v45, %v446_v51 }
 0x136   :  { %v444_v13 = vadd.f32 %v428_v11, %v343_v46 }
 0x137   :  { %v405_v14 = vpop.permute.xlu1 %404  ;;  %v483_v22 = vmax.f32 %v467_v4, 0.0 }
 0x138   :  { %v465_v62 = vadd.f32 %v1322_v45, %v444_v13  ;;  %v429_v16 = vmul.f32 %v1289_v12, %v405_v14 }
 0x13a   :  { %v481_v38 = vmax.f32 %v465_v62, 0.0  ;;  %v445_v17 = vadd.f32 %v429_v16, %v344_v15 }
 0x13c   :  { %v466_v6 = vadd.f32 %v1322_v45, %v445_v17  ;;  %v490_v20 = vpack.c.bf16 %v481_v38, %v480_v18  ;;  %v883_v18 = vld [vmem:[#allocation2 + $0x6] ss:$0 sm:$0xff] }
 0x13e   :  { %v482_v21 = vmax.f32 %v466_v6, 0.0  ;;  %952 = vmatprep.mubr.bf16.mxu0 %v490_v20 }
 0x140   :  { %v491_v23 = vpack.c.bf16 %v483_v22, %v482_v21 }
 0x142   :  { %953 = vmatmul.mubr.bf16.gmra.mxu0 %v491_v23 }
 0x19f   :  { %v942_v10 = vpop.f32.mrf.mxu0 }
 0x1a0   :  { %v604_v12 = vadd.f32 %v942_v10, %v874_v60 }
 0x1a1   :  { %v595_v25 = vpop.f32.mrf.mxu0 }
 0x1a2   :  { %v596_v26 = vadd.f32 %v874_v60, %v595_v25  ;;  %v660_v45 = vmax.f32 %v604_v12, 0.0 }
 0x1a3   :  { %v943_v24 = vpop.f32.mrf.mxu0 }
 0x1a4   :  { %v607_v27 = vadd.f32 %v943_v24, %v874_v60  ;;  %v658_v32 = vmax.f32 %v596_v26, 0.0 }
 0x1a5   :  { %v598_v28 = vpop.f32.mrf.mxu0 }
 0x1a6   :  { %v599_v29 = vadd.f32 %v874_v60, %v598_v28  ;;  %v661_v30 = vmax.f32 %v607_v27, 0.0 }
 0x1a7   :  { %v946_v31 = vpop.f32.mrf.mxu0 }
 0x1a8   :  { %v659_v37 = vmax.f32 %v599_v29, 0.0  ;;  %v675_v56 = vpack.c.bf16 %v661_v30, %v660_v45  ;;  %v620_v33 = vadd.f32 %v946_v31, %v874_v60 }
 0x1a9   :  { %v611_v39 = vpop.f32.mrf.mxu0 }
 0x1aa   :  { %v674_v40 = vpack.c.bf16 %v659_v37, %v658_v32  ;;  %v612_v35 = vadd.f32 %v874_v60, %v611_v39  ;;  %v664_v42 = vmax.f32 %v620_v33, 0.0 }
 0x1ab   :  { %v947_v43 = vpop.f32.mrf.mxu0 }
 0x1ac   :  { %v623_v44 = vadd.f32 %v947_v43, %v874_v60  ;;  %972 = vmatprep.mubr.bf16.mxu1 %v674_v40  ;;  %v662_v52 = vmax.f32 %v612_v35, 0.0 }
 0x1ad   :  { %v614_v36 = vpop.f32.mrf.mxu0  ;;  %973 = vmatmul.mubr.bf16.vlgmr.msra.gmra.mxu1 %v675_v56 }
 0x1ae   :  { %v615_v46 = vadd.f32 %v874_v60, %v614_v36  ;;  %v665_v50 = vmax.f32 %v623_v44, 0.0 }
 0x1b0   :  { %v663_v41 = vmax.f32 %v615_v46, 0.0  ;;  %v677_v48 = vpack.c.bf16 %v665_v50, %v664_v42 }
 0x1b2   :  { %v676_v19 = vpack.c.bf16 %v663_v41, %v662_v52 }
 0x1b4   :  { %976 = vmatprep.mubr.bf16.mxu1 %v676_v19 }
 0x1b5   :  { %977 = vmatmul.mubr.bf16.gmra.mxu1 %v677_v48 }
 0x1d4   :  { %v950_v54 = vpop.f32.mrf.mxu0 }
 0x1d5   :  { %v636_v58 = vadd.f32 %v950_v54, %v874_v60 }
 0x1d6   :  { %v627_v34 = vpop.f32.mrf.mxu0 }
 0x1d7   :  { %v628_v57 = vadd.f32 %v874_v60, %v627_v34  ;;  %v668_v47 = vmax.f32 %v636_v58, 0.0 }
 0x1d8   :  { %v951_v55 = vpop.f32.mrf.mxu0 }
 0x1d9   :  { %v639_v53 = vadd.f32 %v951_v55, %v874_v60  ;;  %v666_v0 = vmax.f32 %v628_v57, 0.0 }
 0x1da   :  { %v630_v59 = vpop.f32.mrf.mxu0 }
 0x1db   :  { %v631_v61 = vadd.f32 %v874_v60, %v630_v59  ;;  %v669_v63 = vmax.f32 %v639_v53, 0.0 }
 0x1dd   :  { %v667_v2 = vmax.f32 %v631_v61, 0.0  ;;  %v679_v3 = vpack.c.bf16 %v669_v63, %v668_v47 }
 0x1df   :  { %v678_v1 = vpack.c.bf16 %v667_v2, %v666_v0 }
 0x1e1   :  { %980 = vmatprep.mubr.bf16.mxu1 %v678_v1 }
 0x1e2   :  { %981 = vmatmul.mubr.bf16.gmra.mxu1 %v679_v3 }
 0x202   :  { %v954_v5 = vpop.f32.mrf.mxu0 }
 0x203   :  { %v652_v51 = vadd.f32 %v954_v5, %v874_v60 }
 0x204   :  { %v643_v7 = vpop.f32.mrf.mxu0 }
 0x205   :  { %v644_v9 = vadd.f32 %v874_v60, %v643_v7  ;;  %v672_v16 = vmax.f32 %v652_v51, 0.0 }
 0x206   :  { %v955_v8 = vpop.f32.mrf.mxu0 }
 0x207   :  { %v655_v11 = vadd.f32 %v955_v8, %v874_v60  ;;  %v670_v15 = vmax.f32 %v644_v9, 0.0 }
 0x208   :  { %v646_v13 = vpop.f32.mrf.mxu0 }
 0x209   :  { %v647_v49 = vadd.f32 %v874_v60, %v646_v13  ;;  %v673_v14 = vmax.f32 %v655_v11, 0.0 }
 0x20b   :  { %v671_v62 = vmax.f32 %v647_v49, 0.0  ;;  %v681_v17 = vpack.c.bf16 %v673_v14, %v672_v16 }
 0x20d   :  { %v680_v38 = vpack.c.bf16 %v671_v62, %v670_v15 }
 0x20f   :  { %984 = vmatprep.mubr.bf16.mxu1 %v680_v38 }
 0x210   :  { %985 = vmatmul.mubr.bf16.gmra.mxu1 %v681_v17 }
 0x26d   :  { %v974_v4 = vpop.f32.mrf.mxu1 }
 0x26e   :  { %v794_v6 = vadd.f32 %v974_v4, %v883_v18 }
 0x26f   :  { %v785_v20 = vpop.f32.mrf.mxu1 }
 0x270   :  { %850 = vst [vmem:[%s1449_s3 + $0x10] sm:$0xff] %v794_v6  ;;  %v786_v21 = vadd.f32 %v883_v18, %v785_v20 }
 0x271   :  { %v975_v22 = vpop.f32.mrf.mxu1 }
 0x272   :  { %848 = vst [vmem:[%s1449_s3] sm:$0xff] %v786_v21  ;;  %v797_v23 = vadd.f32 %v975_v22, %v883_v18 }
 0x273   :  { %v788_v10 = vpop.f32.mrf.mxu1 }
 0x274   :  { %851 = vst [vmem:[%s1449_s3 + $0x18] sm:$0xff] %v797_v23  ;;  %v789_v25 = vadd.f32 %v883_v18, %v788_v10 }
 0x275   :  { %v978_v60 = vpop.f32.mrf.mxu1 }
 0x276   :  { %849 = vst [vmem:[%s1449_s3 + $0x8] sm:$0xff] %v789_v25  ;;  %v810_v24 = vadd.f32 %v978_v60, %v883_v18 }
 0x277   :  { %v801_v26 = vpop.f32.mrf.mxu1 }
 0x278   :  { %854 = vst [vmem:[%s1449_s3 + $0x30] sm:$0xff] %v810_v24  ;;  %v802_v27 = vadd.f32 %v883_v18, %v801_v26 }
 0x279   :  { %v979_v12 = vpop.f32.mrf.mxu1 }
 0x27a   :  { %852 = vst [vmem:[%s1449_s3 + $0x20] sm:$0xff] %v802_v27  ;;  %v813_v28 = vadd.f32 %v979_v12, %v883_v18 }
 0x27b   :  { %v804_v29 = vpop.f32.mrf.mxu1 }
 0x27c   :  { %855 = vst [vmem:[%s1449_s3 + $0x38] sm:$0xff] %v813_v28  ;;  %v805_v30 = vadd.f32 %v883_v18, %v804_v29 }
 0x27e   :  { %853 = vst [vmem:[%s1449_s3 + $0x28] sm:$0xff] %v805_v30 }
 0x2a2   :  { %v982_v31 = vpop.f32.mrf.mxu1 }
 0x2a3   :  { %v826_v32 = vadd.f32 %v982_v31, %v883_v18 }
 0x2a4   :  { %v817_v37 = vpop.f32.mrf.mxu1 }
 0x2a5   :  { %858 = vst [vmem:[%s1449_s3 + $0x50] sm:$0xff] %v826_v32  ;;  %v818_v45 = vadd.f32 %v883_v18, %v817_v37 }
 0x2a6   :  { %v983_v39 = vpop.f32.mrf.mxu1 }
 0x2a7   :  { %856 = vst [vmem:[%s1449_s3 + $0x40] sm:$0xff] %v818_v45  ;;  %v829_v40 = vadd.f32 %v983_v39, %v883_v18 }
 0x2a8   :  { %v820_v56 = vpop.f32.mrf.mxu1 }
 0x2a9   :  { %859 = vst [vmem:[%s1449_s3 + $0x58] sm:$0xff] %v829_v40  ;;  %v821_v43 = vadd.f32 %v883_v18, %v820_v56 }
 0x2ab   :  { %857 = vst [vmem:[%s1449_s3 + $0x48] sm:$0xff] %v821_v43 }
 0x2d0   :  { %v986_v35 = vpop.f32.mrf.mxu1 }
 0x2d1   :  { %v842_v44 = vadd.f32 %v986_v35, %v883_v18 }
 0x2d2   :  { %v833_v33 = vpop.f32.mrf.mxu1 }
 0x2d3   :  { %862 = vst [vmem:[%s1449_s3 + $0x70] sm:$0xff] %v842_v44  ;;  %v834_v36 = vadd.f32 %v883_v18, %v833_v33 }
 0x2d4   :  { %v987_v46 = vpop.f32.mrf.mxu1 }
 0x2d5   :  { %860 = vst [vmem:[%s1449_s3 + $0x60] sm:$0xff] %v834_v36  ;;  %v845_v50 = vadd.f32 %v987_v46, %v883_v18 }
 0x2d6   :  { %v836_v52 = vpop.f32.mrf.mxu1 }
 0x2d7   :  { %863 = vst [vmem:[%s1449_s3 + $0x78] sm:$0xff] %v845_v50  ;;  %v837_v41 = vadd.f32 %v883_v18, %v836_v52 }
 0x2d9   :  { %861 = vst [vmem:[%s1449_s3 + $0x68] sm:$0xff] %v837_v41 }
 0x2da   :  { %868 = vsyncpa [#allocation3], 1 }

</bundles_post_ra>
